<compile_context>
chip_gen: v7x
topology: tpu7x:2x2x1
jax: 0.10.0
libtpu: 0.0.40
codegen_flags: <defaults>
</compile_context>

<pallas_src>
import jax
import jax.numpy as jnp
from jax.experimental import pallas as pl
from jax.experimental.pallas import tpu as pltpu

COEF = 0.97  # deterministic "parameter" (flipped_filter = [-coef, 1.0])
MiB = 1024 * 1024


def preemphasis_kernel(x_ref, o_ref, carry_ref):
    tt = pl.program_id(1)                    # time-tile index (innermost axis)
    x = x_ref[...]                           # (TB, TT) f32 in VMEM
    # prev[:, t] = x[:, t-1]; column 0 wraps to x[:, TT-1] (fixed below).
    prev = pltpu.roll(x, shift=1, axis=1)    # positive axis: roll rejects -1
    o_ref[...] = x - COEF * prev
    # Column 0's true predecessor: reflect (x[:, 1]) on the first time tile,
    # otherwise the previous tile's last column carried in VMEM scratch.
    # Single narrow select + masked column store; reuses the loaded `x`.
    boundary = jnp.where(tt == 0, x[:, 1:2], carry_ref[...])
    o_ref[:, 0:1] = x[:, 0:1] - COEF * boundary
    # Save this tile's last column for the next time tile of this batch tile.
    # (Ignored when the next grid step restarts at tt == 0.)
    carry_ref[...] = x[:, -1:]


def _round_up(v: int, m: int) -> int:
    return (v + m - 1) // m * m


def _budgets():
    """(per-buffer tile budget, vmem_limit_bytes), derived per chip generation."""
    vmem_cap = None
    try:
        info = pltpu.get_tpu_info()
        vmem_cap = getattr(info, "vmem_capacity_bytes", None)
    except Exception:
        vmem_cap = None
    if not vmem_cap:
        vmem_cap = 64 * MiB              # conservative fallback: v7x per-TC VMEM
    if vmem_cap <= 64 * MiB:
        per_buffer = 6 * MiB             # v7x-class: 64 MiB physical per TC
    else:
        per_buffer = 12 * MiB            # v5e / v6e: 128 MiB physical
    # 4 live buffers (in + out, double-buffered) + headroom for compiler scratch;
    # never the full physical VMEM.
    vmem_limit = min(vmem_cap - 16 * MiB, 4 * per_buffer + 8 * MiB)
    vmem_limit = max(vmem_limit, 4 * per_buffer + 4 * MiB)
    return per_buffer, int(vmem_limit)


def _pick_tiles(B: int, T: int, per_buffer_bytes: int):
    """(TB, TT) f32 tile with TB*TT*4 <= budget; TB mult. of 8 (or B), TT mult. of 128 (or T)."""
    bpe = 4  # float32
    min_rows = B if B < 8 else 8
    # Time tile: keep T whole if even a minimal-row tile fits the budget,
    # otherwise a 128-multiple sized to the budget (never exceeds it).
    if min_rows * T * bpe <= per_buffer_bytes:
        TT = T
    else:
        TT = max(128, (per_buffer_bytes // (min_rows * bpe)) // 128 * 128)
    # Batch tile: as many rows as fit the budget (multiple of 8, or all of B).
    max_rows = per_buffer_bytes // (TT * bpe)
    if max_rows >= B:
        TB = B
    else:
        TB = max(min_rows, (max_rows // 8) * 8)
    # v7x megacore: guarantee >= 2 batch-grid steps (the "parallel" axis) so both
    # TensorCores get work; the time axis must stay sequential (carry dependence).
    if B >= 16:
        TB = min(TB, _round_up((B + 1) // 2, 8))
    return TB, TT


def preemphasis(x: jax.Array, *, batch_tile=None, time_tile=None) -> jax.Array:
    """x: (B, T) float32 -> (B, T) float32. Matches PreEmphasis.forward (T >= 2)."""
    B, T = x.shape
    assert T >= 2, "reflect padding requires T >= 2"
    per_buffer, vmem_limit = _budgets()
    TB, TT = _pick_tiles(B, T, per_buffer)
    if batch_tile is not None:
        TB = batch_tile
    if time_tile is not None:
        TT = time_tile
    grid = (pl.cdiv(B, TB), pl.cdiv(T, TT))  # time axis last => innermost (carry order)
    return pl.pallas_call(
        preemphasis_kernel,
        out_shape=jax.ShapeDtypeStruct((B, T), x.dtype),
        grid=grid,
        in_specs=[pl.BlockSpec((TB, TT), lambda i, j: (i, j))],
        out_specs=pl.BlockSpec((TB, TT), lambda i, j: (i, j)),
        scratch_shapes=[pltpu.VMEM((TB, 1), jnp.float32)],  # carry: prev tile's last column
        compiler_params=pltpu.CompilerParams(
            dimension_semantics=("parallel", "arbitrary"),
            vmem_limit_bytes=vmem_limit,
        ),
    )(x)


def preemphasis_ref(x: jax.Array) -> jax.Array:
    prev = jnp.concatenate([x[:, 1:2], x[:, :-1]], axis=1)  # reflect pad left by 1
    return x - COEF * prev


if __name__ == "__main__":
    # Small single-block case (default tiling).
    B, T = 8, 256
    x = jax.random.normal(jax.random.PRNGKey(0), (B, T), dtype=jnp.float32)
    out = jax.block_until_ready(preemphasis(x))
    ref = preemphasis_ref(x)
    assert out.shape == (B, T) and out.dtype == jnp.float32
    assert jnp.allclose(out, ref, atol=1e-6, rtol=1e-6), "mismatch vs reference (single block)"

    # Multi-tile case: exercises the time-tile carry and the batch-tile reset
    # (grid = (2 batch tiles, 3 time tiles)), still tiny shapes.
    B2, T2 = 16, 384
    x2 = jax.random.normal(jax.random.PRNGKey(1), (B2, T2), dtype=jnp.float32)
    out2 = jax.block_until_ready(preemphasis(x2, batch_tile=8, time_tile=128))
    ref2 = preemphasis_ref(x2)
    assert jnp.allclose(out2, ref2, atol=1e-6, rtol=1e-6), "mismatch vs reference (tiled)"

    print("KERNEL_OK")
</pallas_src>

<mosaic_0001>
module attributes {stable_mosaic.version = 11 : i64} {
  func.func @preemphasis_kernel(%arg0: i32, %arg1: i32, %arg2: memref<8x256xf32, #tpu.memory_space<vmem>>, %arg3: memref<8x256xf32, #tpu.memory_space<vmem>>, %arg4: memref<8x1xf32, #tpu.memory_space<vmem>>) attributes {dimension_semantics = [#tpu.dimension_semantics<parallel>, #tpu.dimension_semantics<arbitrary>], iteration_bounds = array<i64: 1, 1>, scalar_prefetch = 0 : i64, scratch_operands = 1 : i64, tpu.core_type = #tpu.core_type<tc>, window_params = [{transform_indices = @transform_0, window_bounds = array<i64: 8, 256>}, {transform_indices = @transform_1, window_bounds = array<i64: 8, 256>}]} {
    %c0 = arith.constant 0 : index
    %c0_0 = arith.constant 0 : index
    %0 = vector.load %arg2[%c0, %c0_0] : memref<8x256xf32, #tpu.memory_space<vmem>>, vector<8x256xf32>
    %c1_i32 = arith.constant 1 : i32
    %1 = tpu.dynamic_rotate %0 by %c1_i32 dim 1 : vector<8x256xf32>, i32 -> vector<8x256xf32>
    %cst = arith.constant 9.700000e-01 : f32
    %2 = vector.broadcast %cst : f32 to vector<8x256xf32>
    %3 = arith.mulf %2, %1 : vector<8x256xf32>
    %4 = arith.subf %0, %3 : vector<8x256xf32>
    %c0_1 = arith.constant 0 : index
    %c0_2 = arith.constant 0 : index
    %5 = vector.load %arg3[%c0_1, %c0_2] : memref<8x256xf32, #tpu.memory_space<vmem>>, vector<8x256xf32>
    tpu.vector_store %arg3[%c0_1, %c0_2], %4 {strides = array<i32>} : memref<8x256xf32, #tpu.memory_space<vmem>>, vector<8x256xf32>,
    %c0_i32 = arith.constant 0 : i32
    %6 = arith.cmpi eq, %arg1, %c0_i32 : i32
    %7 = vector.extract_strided_slice %0 {offsets = [0, 1], sizes = [8, 1], strides = [1, 1]} : vector<8x256xf32> to vector<8x1xf32>
    %c0_3 = arith.constant 0 : index
    %c0_4 = arith.constant 0 : index
    %8 = vector.load %arg4[%c0_3, %c0_4] : memref<8x1xf32, #tpu.memory_space<vmem>>, vector<8x1xf32>
    %9 = arith.select %6, %7, %8 : vector<8x1xf32>
    %10 = vector.extract_strided_slice %0 {offsets = [0, 0], sizes = [8, 1], strides = [1, 1]} : vector<8x256xf32> to vector<8x1xf32>
    %cst_5 = arith.constant 9.700000e-01 : f32
    %11 = vector.broadcast %cst_5 : f32 to vector<8x1xf32>
    %12 = arith.mulf %11, %9 : vector<8x1xf32>
    %13 = arith.subf %10, %12 : vector<8x1xf32>
    %c0_6 = arith.constant 0 : index
    %c0_7 = arith.constant 0 : index
    %14 = vector.load %arg3[%c0_6, %c0_7] : memref<8x256xf32, #tpu.memory_space<vmem>>, vector<8x1xf32>
    tpu.vector_store %arg3[%c0_6, %c0_7], %13 {strides = array<i32>} : memref<8x256xf32, #tpu.memory_space<vmem>>, vector<8x1xf32>,
    %15 = vector.extract_strided_slice %0 {offsets = [0, 255], sizes = [8, 1], strides = [1, 1]} : vector<8x256xf32> to vector<8x1xf32>
    %c0_8 = arith.constant 0 : index
    %c0_9 = arith.constant 0 : index
    %16 = vector.load %arg4[%c0_8, %c0_9] : memref<8x1xf32, #tpu.memory_space<vmem>>, vector<8x1xf32>
    tpu.vector_store %arg4[%c0_8, %c0_9], %15 {strides = array<i32>} : memref<8x1xf32, #tpu.memory_space<vmem>>, vector<8x1xf32>,
    return
  }
  func.func @transform_0(%arg0: i32, %arg1: i32) -> (i32, i32) {
    %c0_i32 = arith.constant 0 : i32
    return %arg0, %arg1 : i32, i32
  }
  func.func @transform_1(%arg0: i32, %arg1: i32) -> (i32, i32) {
    %c0_i32 = arith.constant 0 : i32
    return %arg0, %arg1 : i32, i32
  }
}

</mosaic_0001>

<bundles_post_ra>
// kernel: tpu_custom_call.1
= control target key start
LH: loop header
LB: loop body
LE: loop exit
PB: predicated region body
PF: predicated region fallthrough
CT: control target
= control target key end

     0   :  { %6 = vsyncpa [#allocation4], 0  ;;  %s166_s0 = inlined_call_operand.hbm [shape: f32[8,256], index: 0, kind: input, shape index: {}]   ;;  %s167_s1 = inlined_call_operand.hbm [shape: f32[8,256], index: 1, kind: output, shape index: {}]  }
   0x1   :  { %7 = vsyncpa [#allocation5], 0  ;;  %s128_s6 = smov [#allocation3]   ;;  %s80_s10 = scalar_lea.hbm %s166_s0, 256 }
   0x2   :  { %s14_s7 = sshll.u32 %s128_s6, 4  ;;  %p81_p0 = scmp.ne.s32.totalorder %s166_s0, %s80_s10  ;;  %s15_s7 = int_to_ptr.vmem [resolvable:$true] %s14_s7 }
   0x3   :  { %p84_p1 = scmp.lt.u32.totalorder %s80_s10, %s166_s0 }
   0x5   :  { %p86_p2 = pnand %p84_p1, %p81_p0 }
   0x7   :  { %89 = shalt.err (!%p86_p2)
}
   0x8   :  { %s90_s15 = scalar_lea.vmem %s15_s7, 256  ;;  %p95_p4 = scmp.lt.s32.totalorder %s15_s7, %s15_s7 }
   0x9   :  { %p91_p3 = scmp.ne.s32.totalorder %s15_s7, %s90_s15  ;;  %p96_p5 = scmp.lt.s32.totalorder %s90_s15, %s90_s15 }
   0xb   :  { %p97_p6 = por %p96_p5, %p95_p4 }
   0xd   :  { %p98_p7 = pnand %p97_p6, %p91_p3 }
   0xf   :  { %101 = shalt.err (!%p98_p7)
}
  0x10   :  { %17 = dma.hbm_to_vmem [thread:$0]  %s166_s0, 256, %s15_s7, [#allocation4]  }
  0x11   :  { %124 = dma.done.wait [#allocation4], 256  }
  0x12   :  { %125 = vsyncadd [#allocation4], 4294967040  ;;  %v21_v0 = vld [vmem:[#allocation3] sm:$0xff]  ;;  %s129_s18 = smov 1   ;;  %v22_v2 = vld [vmem:[#allocation3 + $0x8] sm:$0xff]  ;;  %s130_s19 = smov 127   ;;  %v27_v3 = vlaneseq }
  0x13   :  { %23 = vrot.lane.b32.xlu0 %v21_v0, %s129_s18  ;;  %v48_v1 = vmul.f32 0.97, %v21_v0  ;;  %vm54_vm1 = vcmask 7168   ;;  %s131_s0 = smov [#allocation6]  }
  0x14   :  { %v28_v4 = vand.u32 127, %v27_v3  ;;  %s67_s20 = sshll.u32 %s131_s0, 4  ;;  %s68_s20 = int_to_ptr.vmem [resolvable:$true] %s67_s20 }
  0x15   :  { %50 = vrot.lane.b32.xlu1 %v48_v1, %s130_s19  ;;  %s102_s21 = scalar_lea.vmem %s68_s20, 256  ;;  %p107_p9 = scmp.lt.s32.totalorder %s68_s20, %s68_s20 }
  0x16   :  { %vm29_vm0 = vcmp.lt.s32.totalorder %v28_v4, 1  ;;  %p103_p8 = scmp.ne.s32.totalorder %s68_s20, %s102_s21  ;;  %p108_p10 = scmp.lt.s32.totalorder %s102_s21, %s102_s21 }
  0x17   :  { %25 = vrot.lane.b32.xlu0 %v22_v2, %s129_s18 }
  0x18   :  { %p109_p11 = por %p108_p10, %p107_p9 }
  0x19   :  { %57 = vrot.lane.b32.xlu1 %v22_v2, %s129_s18 }
  0x1a   :  { %p110_p12 = pnand %p109_p11, %p103_p8 }
  0x85   :  { %v24_v5 = vpop.permute.xlu0 %23 }
  0x87   :  { %v51_v6 = vpop.permute.xlu1 %50 }
  0x88   :  { %v53_v13 = vsub.f32 %v21_v0, %v51_v6 }
  0x89   :  { %v26_v7 = vpop.permute.xlu0 %25 }
  0x8a   :  { %v30_v8 = vsel %vm29_vm0, %v24_v5, %v26_v7  ;;  %v31_v9 = vsel %vm29_vm0, %v26_v7, %v24_v5 }
  0x8b   :  { %v32_v10 = vmul.f32 0.97, %v31_v9  ;;  %v33_v11 = vmul.f32 0.97, %v30_v8  ;;  %v58_v12 = vpop.permute.xlu1 %57 }
  0x8d   :  { %v34_v14 = vsub.f32 %v21_v0, %v32_v10  ;;  %v35_v15 = vsub.f32 %v22_v2, %v33_v11 }
  0x8f   :  { %36 = vst [vmem:[#allocation6] sm:$0xff] %v34_v14  ;;  %37 = vst [vmem:[#allocation6 + $0x8] sm:$0xff] %v35_v15 }
  0x90   :  { %55 = vst.msk [vmem:[#allocation6] sm:$0xff] %vm54_vm1, %v53_v13 }
  0x91   :  { %113 = shalt.err (!%p110_p12)
}
  0x92   :  { %s114_s24 = scalar_lea.hbm %s167_s1, 256 }
  0x93   :  { %p115_p13 = scmp.ne.s32.totalorder %s167_s1, %s114_s24  ;;  %p118_p0 = scmp.lt.u32.totalorder %s114_s24, %s167_s1 }
  0x95   :  { %p120_p1 = pnand %p118_p0, %p115_p13 }
  0x97   :  { %123 = shalt.err (!%p120_p1)
}
  0x98   :  { %70 = dma.vmem_to_hbm [thread:$0]  %s68_s20, 256, %s167_s1, [#allocation5]  }
  0x99   :  { %126 = dma.done.wait [#allocation5], 256  }
  0x9a   :  { %127 = vsyncadd [#allocation5], 4294967040 }
  0x9b   :  { %74 = vsyncpa [#allocation4], 1 }
  0x9c   :  { %75 = vsyncpa [#allocation5], 1 }

</bundles_post_ra>
